<compile_context>
chip_gen: v7x
topology: tpu7x:2x2x1
jax: 0.10.0
libtpu: 0.0.40
codegen_flags: <defaults>
</compile_context>

<pallas_src>
import jax
import jax.numpy as jnp
from jax.experimental import pallas as pl
from jax.experimental.pallas import tpu as pltpu

SELU_ALPHA = 1.6732632423543772
SELU_SCALE = 1.0507009873554805


def _round_up(n, m):
    return ((n + m - 1) // m) * m


def mlp_kernel(x_ref, w1_ref, b1_ref, w2_ref, b2_ref, mask_ref, o_ref):
    # Cast activations to bf16 only at the MXU boundary (f32 accumulation on the MXU).
    x = x_ref[...].astype(jnp.bfloat16)

    # ---- Linear(256 -> 128) ----
    h = jnp.dot(x, w1_ref[...], preferred_element_type=jnp.float32)
    h = h + b1_ref[...]                                    # (TB,128) + (1,128)

    # ---- SELU (clamp exp arg so the untaken branch never produces inf) ----
    h = SELU_SCALE * jnp.where(
        h > 0.0, h, SELU_ALPHA * (jnp.exp(jnp.minimum(h, 0.0)) - 1.0))

    # ---- Linear(128 -> Cp) ----
    z = jnp.dot(h.astype(jnp.bfloat16), w2_ref[...],
                preferred_element_type=jnp.float32)
    z = z + b2_ref[...]                                    # (TB,Cp) + (1,Cp)

    # ---- Sigmoid: approx EUP reciprocal (error ~1e-3, washed out by exact softmax norm) ----
    s = pl.reciprocal(1.0 + jnp.exp(-z), approx=True)

    # ---- Softmax over the class axis ----
    # s is bounded in (0,1): exp cannot overflow -> no max-subtraction needed.
    # Padded class columns are zeroed via the resident {0,1} mask.
    e = jnp.exp(s) * mask_ref[...]
    denom = jnp.sum(e, axis=1, keepdims=True)
    # Exact divide so every row sums to 1 at f32 precision.
    o_ref[...] = (e / denom).astype(o_ref.dtype)


def prepare_params(w1, b1, w2, b2):
    """One-time parameter preparation (cast + class padding), kept off the hot path."""
    H = w1.shape[1]
    C = w2.shape[1]
    Cp = max(128, _round_up(C, 128))          # lane-dense class axis
    return dict(
        w1=w1.astype(jnp.bfloat16),
        b1=b1.reshape(1, H).astype(jnp.float32),
        w2=jnp.zeros((H, Cp), jnp.bfloat16).at[:, :C].set(w2.astype(jnp.bfloat16)),
        b2=jnp.zeros((1, Cp), jnp.float32).at[:, :C].set(b2.astype(jnp.float32)),
        mask=(jnp.arange(Cp) < C).astype(jnp.float32).reshape(1, Cp),
        n_classes=C,
    )


def neural_network_e_forward(x, params, *, block_rows=1024, trim_classes=True):
    """x: (B,256) f32 -> (B, nClasses) f32 (or (B,128) zero-padded if trim_classes=False)."""
    B, K = x.shape
    w1, b1, w2, b2, mask = (params["w1"], params["b1"], params["w2"],
                            params["b2"], params["mask"])
    H = w1.shape[1]
    Cp = w2.shape[1]
    C = params["n_classes"]

    # Batch tile: large (amortize ~0.35us/grid-step, bigger DMAs), multiple of 8, and
    # when B > 8 keep at least 2 grid steps so the "parallel" axis spans both v7x TCs.
    if B <= 8:
        TB = B
    else:
        TB = min(block_rows, _round_up(pl.cdiv(B, 2), 8))
    grid = (pl.cdiv(B, TB),)

    out_padded = pl.pallas_call(
        mlp_kernel,
        out_shape=jax.ShapeDtypeStruct((B, Cp), jnp.float32),
        grid_spec=pl.GridSpec(
            grid=grid,
            in_specs=[
                pl.BlockSpec((TB, K), lambda i: (i, 0)),   # x tile (f32), streamed
                pl.BlockSpec((K, H), lambda i: (0, 0)),    # W1 bf16, VMEM-resident
                pl.BlockSpec((1, H), lambda i: (0, 0)),    # b1 f32, resident
                pl.BlockSpec((H, Cp), lambda i: (0, 0)),   # W2 bf16 (class-padded), resident
                pl.BlockSpec((1, Cp), lambda i: (0, 0)),   # b2 f32 (padded), resident
                pl.BlockSpec((1, Cp), lambda i: (0, 0)),   # class-valid mask, resident
            ],
            out_specs=pl.BlockSpec((TB, Cp), lambda i: (i, 0)),   # lane-dense output block
        ),
        compiler_params=pltpu.CompilerParams(
            dimension_semantics=("parallel",),     # shard batch tiles across TCs (v7x)
            vmem_limit_bytes=32 * 1024 * 1024,     # ample headroom even at TB=1024 (~3 MiB used)
        ),
    )(x.astype(jnp.float32), w1, b1, w2, b2, mask)

    if not trim_classes:
        # Padded columns are exact zeros; perf-sensitive consumers should take this
        # (B, 128) block directly and fuse their own slice/argmax/loss.
        return out_padded
    return out_padded[:, :C]


def _reference(x, w1, b1, w2, b2):
    h = x @ w1 + b1
    h = SELU_SCALE * jnp.where(h > 0, h, SELU_ALPHA * (jnp.exp(h) - 1.0))
    z = h @ w2 + b2
    s = jax.nn.sigmoid(z)
    return jax.nn.softmax(s, axis=1)


if __name__ == "__main__":
    n_classes = 10
    batch = 8

    key = jax.random.PRNGKey(0)
    kx, k1, k2, k3, k4, kx2 = jax.random.split(key, 6)

    x = jax.random.normal(kx, (batch, 256), dtype=jnp.float32)
    lim1 = 1.0 / jnp.sqrt(256.0)
    w1 = jax.random.uniform(k1, (256, 128), minval=-lim1, maxval=lim1, dtype=jnp.float32)
    b1 = jax.random.uniform(k2, (128,), minval=-lim1, maxval=lim1, dtype=jnp.float32)
    lim2 = 1.0 / jnp.sqrt(128.0)
    w2 = jax.random.uniform(k3, (128, n_classes), minval=-lim2, maxval=lim2, dtype=jnp.float32)
    b2 = jax.random.uniform(k4, (n_classes,), minval=-lim2, maxval=lim2, dtype=jnp.float32)

    params = prepare_params(w1, b1, w2, b2)

    # --- small batch, single tile ---
    out = jax.block_until_ready(neural_network_e_forward(x, params))
    ref = _reference(x, w1, b1, w2, b2)
    assert out.shape == (batch, n_classes)
    # Documented precision decision: bf16 MXU operands + approx EUP sigmoid give ~1e-3-level
    # elementwise deviation vs. the pure-f32 reference.
    assert jnp.allclose(out, ref, atol=5e-3, rtol=5e-3), "mismatch vs JAX reference (small batch)"
    # Exact normalization: rows sum to 1 at f32 precision.
    assert jnp.allclose(jnp.sum(out, axis=1), 1.0, atol=1e-4), "softmax rows must sum to 1"

    # --- multi-tile batch (grid = 2, partial last tile handled by masked stores) ---
    big_b = 40
    x_big = jax.random.normal(kx2, (big_b, 256), dtype=jnp.float32)
    out_big = jax.block_until_ready(neural_network_e_forward(x_big, params))
    ref_big = _reference(x_big, w1, b1, w2, b2)
    assert out_big.shape == (big_b, n_classes)
    assert jnp.allclose(out_big, ref_big, atol=5e-3, rtol=5e-3), "mismatch vs JAX reference (tiled)"
    assert jnp.allclose(jnp.sum(out_big, axis=1), 1.0, atol=1e-4), "softmax rows must sum to 1"

    # --- padded-output fast path: columns C..127 are exact zeros (no wrapper slice pass) ---
    out_pad = jax.block_until_ready(neural_network_e_forward(x, params, trim_classes=False))
    assert out_pad.shape == (batch, 128)
    assert jnp.allclose(out_pad[:, n_classes:], 0.0)
    assert jnp.allclose(out_pad[:, :n_classes], out)

    print("KERNEL_OK")
</pallas_src>

<mosaic_0001>
module attributes {stable_mosaic.version = 11 : i64} {
  func.func @mlp_kernel(%arg0: i32, %arg1: memref<8x256xf32, #tpu.memory_space<vmem>>, %arg2: memref<256x128xbf16, #tpu.memory_space<vmem>>, %arg3: memref<1x128xf32, #tpu.memory_space<vmem>>, %arg4: memref<128x128xbf16, #tpu.memory_space<vmem>>, %arg5: memref<1x128xf32, #tpu.memory_space<vmem>>, %arg6: memref<1x128xf32, #tpu.memory_space<vmem>>, %arg7: memref<8x128xf32, #tpu.memory_space<vmem>>) attributes {dimension_semantics = [#tpu.dimension_semantics<parallel>], iteration_bounds = array<i64: 1>, scalar_prefetch = 0 : i64, scratch_operands = 0 : i64, tpu.core_type = #tpu.core_type<tc>, window_params = [{transform_indices = @transform_0, window_bounds = array<i64: 8, 256>}, {pipeline_mode = #tpu.pipeline_mode<synchronous>, transform_indices = @transform_1, window_bounds = array<i64: 256, 128>}, {pipeline_mode = #tpu.pipeline_mode<synchronous>, transform_indices = @transform_2, window_bounds = array<i64: 1, 128>}, {pipeline_mode = #tpu.pipeline_mode<synchronous>, transform_indices = @transform_3, window_bounds = array<i64: 128, 128>}, {pipeline_mode = #tpu.pipeline_mode<synchronous>, transform_indices = @transform_4, window_bounds = array<i64: 1, 128>}, {pipeline_mode = #tpu.pipeline_mode<synchronous>, transform_indices = @transform_5, window_bounds = array<i64: 1, 128>}, {transform_indices = @transform_6, window_bounds = array<i64: 8, 128>}]} {
    %c0 = arith.constant 0 : index
    %c0_0 = arith.constant 0 : index
    %0 = vector.load %arg1[%c0, %c0_0] : memref<8x256xf32, #tpu.memory_space<vmem>>, vector<8x256xf32>
    %1 = arith.truncf %0 : vector<8x256xf32> to vector<8x256xbf16>
    %c0_1 = arith.constant 0 : index
    %c0_2 = arith.constant 0 : index
    %2 = vector.load %arg2[%c0_1, %c0_2] : memref<256x128xbf16, #tpu.memory_space<vmem>>, vector<256x128xbf16>
    %cst = arith.constant dense<0.000000e+00> : vector<8x128xf32>
    %3 = tpu.matmul %1, %2, %cst {dimension_numbers = #tpu.dot_dimension_numbers<[1], [0], [0], [1], [0, 0, 1, 1], [], []>} : vector<8x256xbf16>, vector<256x128xbf16>, vector<8x128xf32> -> vector<8x128xf32>
    %c0_3 = arith.constant 0 : index
    %c0_4 = arith.constant 0 : index
    %4 = vector.load %arg3[%c0_3, %c0_4] : memref<1x128xf32, #tpu.memory_space<vmem>>, vector<1x128xf32>
    %5 = vector.broadcast %4 : vector<1x128xf32> to vector<8x128xf32>
    %6 = arith.addf %3, %5 : vector<8x128xf32>
    %cst_5 = arith.constant 0.000000e+00 : f32
    %7 = vector.broadcast %cst_5 : f32 to vector<8x128xf32>
    %8 = arith.cmpf ogt, %6, %7 : vector<8x128xf32>
    %cst_6 = arith.constant 0.000000e+00 : f32
    %9 = vector.broadcast %cst_6 : f32 to vector<8x128xf32>
    %10 = arith.minimumf %6, %9 : vector<8x128xf32>
    %11 = math.exp %10 : vector<8x128xf32>
    %cst_7 = arith.constant 1.000000e+00 : f32
    %12 = vector.broadcast %cst_7 : f32 to vector<8x128xf32>
    %13 = arith.subf %11, %12 : vector<8x128xf32>
    %cst_8 = arith.constant 1.67326319 : f32
    %14 = vector.broadcast %cst_8 : f32 to vector<8x128xf32>
    %15 = arith.mulf %14, %13 : vector<8x128xf32>
    %16 = arith.select %8, %6, %15 : vector<8x128xi1>, vector<8x128xf32>
    %cst_9 = arith.constant 1.05070102 : f32
    %17 = vector.broadcast %cst_9 : f32 to vector<8x128xf32>
    %18 = arith.mulf %17, %16 : vector<8x128xf32>
    %19 = arith.truncf %18 : vector<8x128xf32> to vector<8x128xbf16>
    %c0_10 = arith.constant 0 : index
    %c0_11 = arith.constant 0 : index
    %20 = vector.load %arg4[%c0_10, %c0_11] : memref<128x128xbf16, #tpu.memory_space<vmem>>, vector<128x128xbf16>
    %cst_12 = arith.constant dense<0.000000e+00> : vector<8x128xf32>
    %21 = tpu.matmul %19, %20, %cst_12 {dimension_numbers = #tpu.dot_dimension_numbers<[1], [0], [0], [1], [0, 0, 1, 1], [], []>} : vector<8x128xbf16>, vector<128x128xbf16>, vector<8x128xf32> -> vector<8x128xf32>
    %c0_13 = arith.constant 0 : index
    %c0_14 = arith.constant 0 : index
    %22 = vector.load %arg5[%c0_13, %c0_14] : memref<1x128xf32, #tpu.memory_space<vmem>>, vector<1x128xf32>
    %23 = vector.broadcast %22 : vector<1x128xf32> to vector<8x128xf32>
    %24 = arith.addf %21, %23 : vector<8x128xf32>
    %cst_15 = arith.constant 0.000000e+00 : f32
    %25 = vector.broadcast %cst_15 : f32 to vector<8x128xf32>
    %26 = arith.subf %25, %24 : vector<8x128xf32>
    %27 = math.exp %26 : vector<8x128xf32>
    %cst_16 = arith.constant 1.000000e+00 : f32
    %28 = vector.broadcast %cst_16 : f32 to vector<8x128xf32>
    %29 = arith.addf %28, %27 : vector<8x128xf32>
    %30 = tpu.reciprocal %29 {approx = true} : vector<8x128xf32> -> vector<8x128xf32>
    %31 = math.exp %30 : vector<8x128xf32>
    %c0_17 = arith.constant 0 : index
    %c0_18 = arith.constant 0 : index
    %32 = vector.load %arg6[%c0_17, %c0_18] : memref<1x128xf32, #tpu.memory_space<vmem>>, vector<1x128xf32>
    %33 = vector.broadcast %32 : vector<1x128xf32> to vector<8x128xf32>
    %34 = arith.mulf %31, %33 : vector<8x128xf32>
    %cst_19 = arith.constant dense<0.000000e+00> : vector<8xf32>
    %35 = vector.multi_reduction <add>, %34, %cst_19 [1] : vector<8x128xf32> to vector<8xf32>
    %36 = vector.shape_cast %35 : vector<8xf32> to vector<8x1xf32>
    %37 = vector.broadcast %36 : vector<8x1xf32> to vector<8x128xf32>
    %38 = arith.divf %34, %37 : vector<8x128xf32>
    %c0_20 = arith.constant 0 : index
    %c0_21 = arith.constant 0 : index
    %39 = vector.load %arg7[%c0_20, %c0_21] : memref<8x128xf32, #tpu.memory_space<vmem>>, vector<8x128xf32>
    tpu.vector_store %arg7[%c0_20, %c0_21], %38 {strides = array<i32>} : memref<8x128xf32, #tpu.memory_space<vmem>>, vector<8x128xf32>,
    return
  }
  func.func @transform_0(%arg0: i32) -> (i32, i32) {
    %c0_i32 = arith.constant 0 : i32
    %c0_i32_0 = arith.constant 0 : i32
    return %arg0, %c0_i32 : i32, i32
  }
  func.func @transform_1(%arg0: i32) -> (i32, i32) {
    %c0_i32 = arith.constant 0 : i32
    %c0_i32_0 = arith.constant 0 : i32
    %c0_i32_1 = arith.constant 0 : i32
    return %c0_i32, %c0_i32_0 : i32, i32
  }
  func.func @transform_2(%arg0: i32) -> (i32, i32) {
    %c0_i32 = arith.constant 0 : i32
    %c0_i32_0 = arith.constant 0 : i32
    %c0_i32_1 = arith.constant 0 : i32
    return %c0_i32, %c0_i32_0 : i32, i32
  }
  func.func @transform_3(%arg0: i32) -> (i32, i32) {
    %c0_i32 = arith.constant 0 : i32
    %c0_i32_0 = arith.constant 0 : i32
    %c0_i32_1 = arith.constant 0 : i32
    return %c0_i32, %c0_i32_0 : i32, i32
  }
  func.func @transform_4(%arg0: i32) -> (i32, i32) {
    %c0_i32 = arith.constant 0 : i32
    %c0_i32_0 = arith.constant 0 : i32
    %c0_i32_1 = arith.constant 0 : i32
    return %c0_i32, %c0_i32_0 : i32, i32
  }
  func.func @transform_5(%arg0: i32) -> (i32, i32) {
    %c0_i32 = arith.constant 0 : i32
    %c0_i32_0 = arith.constant 0 : i32
    %c0_i32_1 = arith.constant 0 : i32
    return %c0_i32, %c0_i32_0 : i32, i32
  }
  func.func @transform_6(%arg0: i32) -> (i32, i32) {
    %c0_i32 = arith.constant 0 : i32
    %c0_i32_0 = arith.constant 0 : i32
    return %arg0, %c0_i32 : i32, i32
  }
}

</mosaic_0001>

<bundles_post_ra>
// kernel: tpu_custom_call.1
= control target key start
LH: loop header
LB: loop body
LE: loop exit
PB: predicated region body
PF: predicated region fallthrough
CT: control target
= control target key end

     0   :  { %11 = vsyncpa [#allocation3], 0  ;;  %s720_s0 = inlined_call_operand.hbm [shape: f32[8,256], index: 0, kind: input, shape index: {}]   ;;  %s721_s1 = inlined_call_operand.hbm [shape: bf16[256,128], index: 1, kind: input, shape index: {}]   ;;  %s722_s2 = inlined_call_operand.vmem [shape: f32[1,128], index: 2, kind: input, shape index: {}]   ;;  %s723_s3 = inlined_call_operand.hbm [shape: bf16[128,128], index: 3, kind: input, shape index: {}]   ;;  %s724_s4 = inlined_call_operand.vmem [shape: f32[1,128], index: 4, kind: input, shape index: {}]   ;;  %s725_s5 = inlined_call_operand.vmem [shape: f32[1,128], index: 5, kind: input, shape index: {}]   ;;  %s726_s6 = inlined_call_operand.hbm [shape: f32[8,128], index: 6, kind: output, shape index: {}]  }
   0x1   :  { %12 = vsyncpa [#allocation6], 0 }
   0x2   :  { %13 = vsyncpa [#allocation4], 0  ;;  %s614_s21 = smov [#allocation5]   ;;  %s520_s25 = scalar_lea.hbm %s721_s1, 2048 }
   0x3   :  { %s29_s22 = sshll.u32 %s614_s21, 4  ;;  %p521_p0 = scmp.ne.s32.totalorder %s721_s1, %s520_s25  ;;  %s30_s22 = int_to_ptr.vmem [resolvable:$true] %s29_s22 }
   0x4   :  { %p524_p1 = scmp.lt.u32.totalorder %s520_s25, %s721_s1 }
   0x6   :  { %p526_p2 = pnand %p524_p1, %p521_p0 }
   0x8   :  { %529 = shalt.err (!%p526_p2)
}
   0x9   :  { %s530_s30 = scalar_lea.vmem %s30_s22, 2048  ;;  %p535_p4 = scmp.lt.s32.totalorder %s30_s22, %s30_s22 }
   0xa   :  { %p531_p3 = scmp.ne.s32.totalorder %s30_s22, %s530_s30  ;;  %p536_p5 = scmp.lt.s32.totalorder %s530_s30, %s530_s30 }
   0xc   :  { %p537_p6 = por %p536_p5, %p535_p4 }
   0xe   :  { %p538_p7 = pnand %p537_p6, %p531_p3 }
  0x10   :  { %541 = shalt.err (!%p538_p7)
}
  0x11   :  { %s615_s7 = smov 64   ;;  %s616_s8 = smov 4  }
  0x12   :  { %35 = dma.hbm_to_vmem [thread:$0]  %s721_s1, 2048, %s30_s22, [#allocation6], %s615_s7, %s615_s7, %s616_s8  }
  0x13   :  { %s617_s11 = smov [#allocation2]   ;;  %s618_s13 = smov [#allocation7]  }
  0x14   :  { %s20_s12 = sshll.u32 %s617_s11, 4  ;;  %s43_s14 = sshll.u32 %s618_s13, 4  ;;  %s21_s12 = int_to_ptr.vmem [resolvable:$true] %s20_s12  ;;  %s44_s14 = int_to_ptr.vmem [resolvable:$true] %s43_s14 }
  0x15   :  { %s542_s17 = scalar_lea.hbm %s720_s0, 256 }
  0x16   :  { %p543_p8 = scmp.ne.s32.totalorder %s720_s0, %s542_s17  ;;  %p546_p9 = scmp.lt.u32.totalorder %s542_s17, %s720_s0 }
  0x18   :  { %p548_p10 = pnand %p546_p9, %p543_p8 }
  0x1a   :  { %551 = shalt.err (!%p548_p10)
}
  0x1b   :  { %s552_s1 = scalar_lea.vmem %s21_s12, 256  ;;  %p557_p12 = scmp.lt.s32.totalorder %s21_s12, %s21_s12 }
  0x1c   :  { %p553_p11 = scmp.ne.s32.totalorder %s21_s12, %s552_s1  ;;  %p558_p13 = scmp.lt.s32.totalorder %s552_s1, %s552_s1 }
  0x1e   :  { %p559_p0 = por %p558_p13, %p557_p12 }
  0x20   :  { %p560_p1 = pnand %p559_p0, %p553_p11 }
  0x22   :  { %563 = shalt.err (!%p560_p1)
}
  0x23   :  { %23 = dma.hbm_to_vmem [thread:$0]  %s720_s0, 256, %s21_s12, [#allocation3]  }
  0x24   :  { %s564_s26 = scalar_lea.hbm %s723_s3, 1024 }
  0x25   :  { %p565_p2 = scmp.ne.s32.totalorder %s723_s3, %s564_s26  ;;  %p568_p3 = scmp.lt.u32.totalorder %s564_s26, %s723_s3 }
  0x27   :  { %p570_p4 = pnand %p568_p3, %p565_p2 }
  0x29   :  { %573 = shalt.err (!%p570_p4)
}
  0x2a   :  { %s574_s9 = scalar_lea.vmem %s44_s14, 1024  ;;  %p579_p6 = scmp.lt.s32.totalorder %s44_s14, %s44_s14 }
  0x2b   :  { %p575_p5 = scmp.ne.s32.totalorder %s44_s14, %s574_s9  ;;  %p580_p7 = scmp.lt.s32.totalorder %s574_s9, %s574_s9 }
  0x2d   :  { %p581_p8 = por %p580_p7, %p579_p6 }
  0x2f   :  { %p582_p9 = pnand %p581_p8, %p575_p5 }
  0x31   :  { %585 = shalt.err (!%p582_p9)
}
  0x32   :  { %49 = dma.hbm_to_vmem [thread:$0]  %s723_s3, 1024, %s44_s14, [#allocation6], %s615_s7, %s615_s7, %s616_s8  }
  0x33   :  { %608 = dma.done.wait [#allocation3], 256  }
  0x34   :  { %609 = vsyncadd [#allocation3], 4294967040 }
  0x35   :  { %610 = dma.done.wait [#allocation6], 3072  }
  0x36   :  { %611 = vsyncadd [#allocation6], 4294964224  ;;  %v619_v0 = vmov 0.0   ;;  %v486_v1 = vld [vmem:[#allocation5 + $0x40] sm:$0xff]   ;;  %v488_v3 = vld [vmem:[#allocation5 + $0x48] sm:$0xff]   ;;  %vm620_vm0 = vmmov 0  }
  0x37   :  { %458 = vmatprep.subr.bf16.mxu1 %v619_v0  ;;  %v487_v2 = vld [vmem:[#allocation5] sm:$0xff]   ;;  %427 = vmatprep.subr.bf16.mxu0 %v486_v1  ;;  %v489_v4 = vld [vmem:[#allocation5 + $0x8] sm:$0xff]   ;;  %v490_v5 = vld [vmem:[#allocation5 + $0x50] sm:$0xff]  }
  0x38   :  { %428 = vmatpush3.bf16.msra.mxu0 %v487_v2  ;;  %v491_v6 = vld [vmem:[#allocation5 + $0x10] sm:$0xff]   ;;  %v492_v7 = vld [vmem:[#allocation5 + $0x58] sm:$0xff]   ;;  %v494_v9 = vld [vmem:[#allocation5 + $0x60] sm:$0xff]   ;;  %474 = vmatprep.mubr.msk.bf16.mxu1 %vm620_vm0, %v619_v0 }
  0x39   :  { %429 = vmatprep.subr.bf16.mxu0 %v488_v3  ;;  %v493_v8 = vld [vmem:[#allocation5 + $0x18] sm:$0xff]   ;;  %v495_v10 = vld [vmem:[#allocation5 + $0x20] sm:$0xff]   ;;  %v496_v11 = vld [vmem:[#allocation5 + $0x68] sm:$0xff]  }
  0x3a   :  { %v65_v12 = vld [vmem:[#allocation2 + $0x8] sm:$0xff]  ;;  %v497_v13 = vld [vmem:[#allocation5 + $0x28] sm:$0xff]   ;;  %v502_v15 = vld [vmem:[#allocation7] sm:$0xff]  }
  0x3b   :  { %v67_v14 = vpack.c.bf16 %v65_v12, %v65_v12  ;;  %v498_v16 = vld [vmem:[#allocation5 + $0x70] sm:$0xff]   ;;  %459 = vmatpush3.bf16.msra.mxu1 %v502_v15  ;;  %v500_v18 = vld [vmem:[#allocation5 + $0x78] sm:$0xff]   ;;  %v503_v22 = vld [vmem:[#allocation7 + $0x8] sm:$0xff]  }
  0x3c   :  { %430 = vmatpush3.bf16.msra.mxu0 %v489_v4  ;;  %460 = vmatprep.subr.bf16.mxu1 %v619_v0  ;;  %v499_v17 = vld [vmem:[#allocation5 + $0x30] sm:$0xff]   ;;  %v501_v19 = vld [vmem:[#allocation5 + $0x38] sm:$0xff]   ;;  %v506_v25 = vld [vmem:[#allocation7 + $0x20] sm:$0xff]  }
  0x3d   :  { %431 = vmatprep.subr.bf16.mxu0 %v490_v5  ;;  %235 = vmatprep.mubr.bf16.mxu0 %v67_v14  ;;  %v64_v20 = vld [vmem:[#allocation2] sm:$0xff]  ;;  %v505_v24 = vld [vmem:[#allocation7 + $0x18] sm:$0xff]   ;;  %v507_v26 = vld [vmem:[#allocation7 + $0x28] sm:$0xff]  }
  0x3e   :  { %v66_v21 = vpack.c.bf16 %v64_v20, %v64_v20  ;;  %v504_v23 = vld [vmem:[#allocation7 + $0x10] sm:$0xff]   ;;  %v509_v28 = vld [vmem:[#allocation7 + $0x38] sm:$0xff]  }
  0x3f   :  { %461 = vmatpush3.bf16.msra.mxu1 %v503_v22  ;;  %v508_v27 = vld [vmem:[#allocation7 + $0x30] sm:$0xff]  }
  0x40   :  { %432 = vmatpush3.bf16.msra.mxu0 %v491_v6  ;;  %462 = vmatprep.subr.bf16.mxu1 %v619_v0  ;;  %v399_v30 = vld [vmem:[%s722_s2] ss:$0 sm:$0xff] }
  0x41   :  { %433 = vmatprep.subr.bf16.mxu0 %v492_v7  ;;  %v417_v44 = vld [vmem:[%s724_s4] ss:$0 sm:$0xff]  ;;  %s621_s4 = smov [#allocation8]  }
  0x42   :  { %v426_v56 = vld [vmem:[%s725_s5] ss:$0 sm:$0xff]  ;;  %s389_s13 = sshll.u32 %s621_s4, 4  ;;  %s390_s13 = int_to_ptr.vmem [resolvable:$true] %s389_s13 }
  0x43   :  { %463 = vmatpush3.bf16.msra.mxu1 %v504_v23  ;;  %s586_s14 = scalar_lea.vmem %s390_s13, 128  ;;  %p591_p11 = scmp.lt.s32.totalorder %s390_s13, %s390_s13 }
  0x44   :  { %434 = vmatpush3.bf16.msra.mxu0 %v493_v8  ;;  %464 = vmatprep.subr.bf16.mxu1 %v619_v0  ;;  %p587_p10 = scmp.ne.s32.totalorder %s390_s13, %s586_s14  ;;  %p592_p12 = scmp.lt.s32.totalorder %s586_s14, %s586_s14 }
  0x45   :  { %435 = vmatprep.subr.bf16.mxu0 %v494_v9 }
  0x46   :  { %p593_p13 = por %p592_p12, %p591_p11 }
  0x47   :  { %465 = vmatpush3.bf16.msra.mxu1 %v505_v24 }
  0x48   :  { %436 = vmatpush3.bf16.msra.mxu0 %v495_v10  ;;  %466 = vmatprep.subr.bf16.mxu1 %v619_v0  ;;  %p594_p0 = pnand %p593_p13, %p587_p10 }
  0x49   :  { %437 = vmatprep.subr.bf16.mxu0 %v496_v11 }
  0x4b   :  { %467 = vmatpush3.bf16.msra.mxu1 %v506_v25 }
  0x4c   :  { %438 = vmatpush3.bf16.msra.mxu0 %v497_v13  ;;  %468 = vmatprep.subr.bf16.mxu1 %v619_v0 }
  0x4d   :  { %439 = vmatprep.subr.bf16.mxu0 %v498_v16 }
  0x4f   :  { %469 = vmatpush3.bf16.msra.mxu1 %v507_v26 }
  0x50   :  { %440 = vmatpush3.bf16.msra.mxu0 %v499_v17  ;;  %470 = vmatprep.subr.bf16.mxu1 %v619_v0 }
  0x51   :  { %441 = vmatprep.subr.bf16.mxu0 %v500_v18 }
  0x53   :  { %471 = vmatpush3.bf16.msra.mxu1 %v508_v27 }
  0x54   :  { %442 = vmatpush3.bf16.msra.mxu0 %v501_v19  ;;  %472 = vmatprep.subr.bf16.mxu1 %v619_v0 }
  0x57   :  { %236 = vmatmul.mubr.bf16.vlgmr.msra.gmra.mrb[0].mxu0 %v66_v21  ;;  %473 = vmatpush3.bf16.msra.mxu1 %v509_v28 }
 0x12a   :  { %v443_v29 = vpop.f32.mrb[0].mxu0 }
 0x12b   :  { %v444_v31 = vpop.f32.mrb[1].mxu0 }
 0x12c   :  { %v445_v32 = vadd.f32 %v444_v31, %v443_v29  ;;  %v446_v33 = vpop.f32.mrb[2].mxu0 }
 0x12d   :  { %v447_v34 = vpop.f32.mrb[3].mxu0 }
 0x12e   :  { %v238_v35 = vadd.f32 %v445_v32, %v399_v30 }
 0x130   :  { %v244_v36 = vmin.f32 %v238_v35, 0.0  ;;  %vm243_vm1 = vcmp.gt.f32.partialorder %v238_v35, 0.0 }
 0x132   :  { %v245_v37 = vmul.f32 1.442695, %v244_v36 }
 0x134   :  { %510 = vpow2.f32 %v245_v37 }
 0x13e   :  { %v511_v38 = vpop.eup %510 }
 0x13f   :  { %v416_v39 = vadd.f32 -1.0, %v511_v38 }
 0x141   :  { %v248_v40 = vmul.f32 1.6732632, %v416_v39 }
 0x143   :  { %v249_v41 = vsel %vm243_vm1, %v238_v35, %v248_v40 }
 0x144   :  { %v250_v42 = vmul.f32 1.050701, %v249_v41 }
 0x146   :  { %v251_v43 = vpack.c.bf16 %v250_v42, %v250_v42 }
 0x148   :  { %475 = vmatmul.mubr.bf16.vlgmr.msra.gmra.mrb[0].mxu1 %v251_v43 }
 0x21b   :  { %v357_v45 = vpop.f32.mrb[0].mxu1 }
 0x21c   :  { %v358_v46 = vadd.f32 %v417_v44, %v357_v45  ;;  %v476_v47 = vpop.f32.mrb[1].mxu1 }
 0x21d   :  { %v360_v48 = vpop.f32.mrb[2].mxu1 }
 0x21e   :  { %v363_v49 = vsub.f32 0.0, %v358_v46  ;;  %v477_v50 = vpop.f32.mrb[3].mxu1 }
 0x220   :  { %v364_v51 = vmul.f32 1.442695, %v363_v49 }
 0x222   :  { %512 = vpow2.f32 %v364_v51 }
 0x22c   :  { %v513_v52 = vpop.eup %512 }
 0x22d   :  { %v366_v53 = vadd.f32 1.0, %v513_v52 }
 0x22f   :  { %514 = vrcp.f32 %v366_v53 }
 0x239   :  { %v515_v54 = vpop.eup %514 }
 0x23a   :  { %v368_v55 = vmul.f32 1.442695, %v515_v54 }
 0x23c   :  { %516 = vpow2.f32 %v368_v55 }
 0x246   :  { %v517_v57 = vpop.eup %516 }
 0x247   :  { %v377_v58 = vmul.f32 %v517_v57, %v426_v56 }
 0x249   :  { %378 = vadd.xlane.f32.xlu0 %v377_v58 }
 0x2d6   :  { %v379_v59 = vpop.xlane.xlu0 %378 }
 0x2d7   :  { %518 = vrcp.f32 %v379_v59 }
 0x2e1   :  { %v519_v60 = vpop.eup %518 }
 0x2e2   :  { %v381_v61 = vmul.f32 %v519_v60, %v377_v58 }
 0x2e4   :  { %382 = vst [vmem:[#allocation8] sm:$0xff] %v381_v61 }
 0x2e5   :  { %597 = shalt.err (!%p594_p0)
}
 0x2e6   :  { %s598_s16 = scalar_lea.hbm %s726_s6, 128 }
 0x2e7   :  { %p599_p1 = scmp.ne.s32.totalorder %s726_s6, %s598_s16  ;;  %p602_p2 = scmp.lt.u32.totalorder %s598_s16, %s726_s6 }
 0x2e9   :  { %p604_p3 = pnand %p602_p2, %p599_p1 }
 0x2eb   :  { %607 = shalt.err (!%p604_p3)
}
 0x2ec   :  { %392 = dma.vmem_to_hbm [thread:$0]  %s390_s13, 128, %s726_s6, [#allocation4]  }
 0x2ed   :  { %612 = dma.done.wait [#allocation4], 128  }
 0x2ee   :  { %613 = vsyncadd [#allocation4], 4294967168 }
 0x2ef   :  { %396 = vsyncpa [#allocation3], 1 }
 0x2f0   :  { %397 = vsyncpa [#allocation6], 1 }
 0x2f1   :  { %398 = vsyncpa [#allocation4], 1 }

</bundles_post_ra>
